<compile_context>
chip_gen: v6e
topology: v6e:2x2x1
jax: 0.10.0
libtpu: 0.0.40
codegen_flags: <defaults>
</compile_context>

<pallas_src>
import math
import functools

import jax
import jax.numpy as jnp
from jax import lax
from jax.experimental import pallas as pl
from jax.experimental.pallas import tpu as pltpu


# ---------------------------------------------------------------------------
# Kernel 1: fused QKV projection   qkv[M, 3H] = x[M, H] @ Wqkv[H, 3H] + b
# ---------------------------------------------------------------------------
def _qkv_proj_kernel(x_ref, w_ref, b_ref, o_ref, acc_ref):
    # grid = (rows, cols, K); K is the reduction axis ("arbitrary", innermost).
    @pl.when(pl.program_id(2) == 0)
    def _init():
        acc_ref[...] = jnp.zeros_like(acc_ref)

    # bf16 operands, f32 accumulation on the MXU.
    acc_ref[...] += jnp.dot(x_ref[...], w_ref[...],
                            preferred_element_type=jnp.float32)

    @pl.when(pl.program_id(2) == pl.num_programs(2) - 1)
    def _finalize():
        o_ref[...] = (acc_ref[...] + b_ref[...]).astype(o_ref.dtype)


def _fused_qkv_projection(x2d, w_qkv, b_qkv, *, bm, bn, bk):
    M, H = x2d.shape
    N = w_qkv.shape[1]
    grid = (pl.cdiv(M, bm), pl.cdiv(N, bn), pl.cdiv(H, bk))
    return pl.pallas_call(
        _qkv_proj_kernel,
        out_shape=jax.ShapeDtypeStruct((M, N), jnp.bfloat16),
        grid_spec=pltpu.PrefetchScalarGridSpec(
            num_scalar_prefetch=0,
            grid=grid,
            in_specs=[
                pl.BlockSpec((bm, bk), lambda i, j, k: (i, k)),   # x tile
                pl.BlockSpec((bk, bn), lambda i, j, k: (k, j)),   # W tile (streamed over K)
                pl.BlockSpec((1, bn), lambda i, j, k: (0, j)),    # bias tile
            ],
            out_specs=pl.BlockSpec((bm, bn), lambda i, j, k: (i, j)),
            scratch_shapes=[pltpu.VMEM((bm, bn), jnp.float32)],
        ),
        compiler_params=pltpu.CompilerParams(
            dimension_semantics=("parallel", "parallel", "arbitrary"),
            # NOTE: size this to the double-buffered tile footprint per TPU
            # generation (v7x has only 64 MiB physical VMEM).
            vmem_limit_bytes=64 * 1024 * 1024),
    )(x2d, w_qkv, b_qkv)


# ---------------------------------------------------------------------------
# Kernel 2: flash attention with causal + padding mask (online softmax)
# ---------------------------------------------------------------------------
def _flash_attn_kernel(mask_ref, q_ref, k_ref, v_ref, o_ref,
                       m_scr, l_scr, acc_scr, *, block_q, block_kv):
    q_idx = pl.program_id(2)
    kv_idx = pl.program_id(3)

    @pl.when(kv_idx == 0)
    def _init():
        m_scr[...] = jnp.full_like(m_scr, -jnp.inf)
        l_scr[...] = jnp.zeros_like(l_scr)
        acc_scr[...] = jnp.zeros_like(acc_scr)

    # Skip key tiles that lie entirely above the causal diagonal (~2x FLOP
    # saving at long T).
    should_compute = kv_idx * block_kv <= q_idx * block_q + (block_q - 1)

    @pl.when(should_compute)
    def _compute():
        q = q_ref[...]            # [block_q, d]  bf16 (already scaled by 1/sqrt(d))
        k = k_ref[...]            # [block_kv, d] bf16
        v = v_ref[...]            # [block_kv, d] bf16

        # scores = q @ k^T, f32 accumulation on the MXU.
        s = lax.dot_general(q, k, (((1,), (1,)), ((), ())),
                            preferred_element_type=jnp.float32)   # [bq, bkv]

        # Block-local causal + padding mask (no [T, T] temporary).
        am = mask_ref[0]                                           # [1, block_kv]
        row = q_idx * block_q + lax.broadcasted_iota(
            jnp.int32, (block_q, block_kv), 0)
        col = kv_idx * block_kv + lax.broadcasted_iota(
            jnp.int32, (block_q, block_kv), 1)
        triu = jnp.where(col > row, jnp.float32(-10000.0), jnp.float32(0.0))
        s = s + jnp.maximum(am + triu, jnp.float32(-10000.0))     # torch.clamp(min=-1e4)

        # Online softmax update (f32 VPU math).
        m_prev = m_scr[...]
        m_new = jnp.maximum(m_prev, jnp.max(s, axis=-1, keepdims=True))
        alpha = jnp.exp(m_prev - m_new)
        p = jnp.exp(s - m_new)
        l_scr[...] = alpha * l_scr[...] + jnp.sum(p, axis=-1, keepdims=True)
        acc_scr[...] = alpha * acc_scr[...] + jnp.dot(
            p.astype(v.dtype), v, preferred_element_type=jnp.float32)
        m_scr[...] = m_new

    # TODO(synk): attention-prob dropout omitted (inference semantics: identity).

    @pl.when(kv_idx == pl.num_programs(3) - 1)
    def _finalize():
        inv_l = pl.reciprocal(l_scr[...], approx=True)   # EUP vrcp
        o_ref[...] = (acc_scr[...] * inv_l).astype(o_ref.dtype)


def _flash_attention(q, k, v, mask, *, block_q, block_kv):
    bs, nh, T, d = q.shape
    block_q = _fit(T, block_q)
    block_kv = _fit(T, block_kv)
    grid = (bs, nh, T // block_q, T // block_kv)

    kernel = functools.partial(_flash_attn_kernel,
                               block_q=block_q, block_kv=block_kv)

    return pl.pallas_call(
        kernel,
        out_shape=jax.ShapeDtypeStruct((bs, nh, T, d), jnp.float32),
        grid_spec=pltpu.PrefetchScalarGridSpec(
            num_scalar_prefetch=0,
            grid=grid,
            in_specs=[
                pl.BlockSpec((1, 1, block_kv),
                             lambda b, h, qi, ki: (b, 0, ki)),          # padding mask
                pl.BlockSpec((None, None, block_q, d),
                             lambda b, h, qi, ki: (b, h, qi, 0)),       # Q tile
                pl.BlockSpec((None, None, block_kv, d),
                             lambda b, h, qi, ki: (b, h, ki, 0)),       # K tile
                pl.BlockSpec((None, None, block_kv, d),
                             lambda b, h, qi, ki: (b, h, ki, 0)),       # V tile
            ],
            out_specs=pl.BlockSpec((None, None, block_q, d),
                                   lambda b, h, qi, ki: (b, h, qi, 0)),
            scratch_shapes=[
                pltpu.VMEM((block_q, 1), jnp.float32),    # running max
                pltpu.VMEM((block_q, 1), jnp.float32),    # running denom
                pltpu.VMEM((block_q, d), jnp.float32),    # output accumulator
            ],
        ),
        compiler_params=pltpu.CompilerParams(
            # batch / head / q-tile parallel (megacore sharding even at bs=1),
            # kv axis is the online-softmax reduction.
            dimension_semantics=("parallel", "parallel", "parallel", "arbitrary"),
            vmem_limit_bytes=64 * 1024 * 1024),
    )(mask, q, k, v)


def _fit(dim, target):
    """Tile size: `target` if it evenly divides `dim`, else the full dim."""
    t = min(target, dim)
    return t if dim % t == 0 else dim


# ---------------------------------------------------------------------------
# Public wrapper (matches the PyTorch module's forward semantics)
# ---------------------------------------------------------------------------
def causal_self_attention(hidden_states, attention_mask, params, num_heads,
                          *, block_q=256, block_kv=512,
                          proj_bm=256, proj_bn=512, proj_bk=512):
    """hidden_states: [bs, T, H] f32; attention_mask: [bs, 1, 1, T] additive."""
    bs, T, H = hidden_states.shape
    head_dim = H // num_heads
    scale = 1.0 / math.sqrt(head_dim)

    # Fuse Q/K/V weights into one [H, 3H] matrix; fold the softmax scale into Q.
    w_qkv = jnp.concatenate(
        [params["wq"] * scale, params["wk"], params["wv"]], axis=1
    ).astype(jnp.bfloat16)
    b_qkv = jnp.concatenate(
        [params["bq"] * scale, params["bk"], params["bv"]], axis=1
    ).astype(jnp.float32)

    x2d = hidden_states.reshape(bs * T, H).astype(jnp.bfloat16)
    qkv = _fused_qkv_projection(
        x2d, w_qkv, b_qkv,
        bm=_fit(bs * T, proj_bm), bn=_fit(3 * H, proj_bn), bk=_fit(H, proj_bk))

    # Head split (wrapper-side layout plumbing).
    qkv = qkv.reshape(bs, T, 3, num_heads, head_dim)
    q = jnp.transpose(qkv[:, :, 0], (0, 2, 1, 3))   # [bs, nh, T, d] bf16
    k = jnp.transpose(qkv[:, :, 1], (0, 2, 1, 3))
    v = jnp.transpose(qkv[:, :, 2], (0, 2, 1, 3))

    mask = attention_mask.reshape(bs, 1, T).astype(jnp.float32)

    out = _flash_attention(q, k, v, mask, block_q=block_q, block_kv=block_kv)
    out = jnp.transpose(out, (0, 2, 1, 3)).reshape(bs, T, H)
    return out.astype(hidden_states.dtype)


# ---------------------------------------------------------------------------
# Pure-JAX reference mirroring the PyTorch forward (f32)
# ---------------------------------------------------------------------------
def reference_attention(x, attention_mask, params, num_heads):
    bs, T, H = x.shape
    d = H // num_heads

    def proj(w, b):
        p = x @ w + b[0]
        p = p.reshape(bs, T, num_heads, d).transpose(0, 2, 1, 3)
        return p

    q = proj(params["wq"], params["bq"])
    k = proj(params["wk"], params["bk"])
    v = proj(params["wv"], params["bv"])

    att = jnp.einsum('bhqd,bhkd->bhqk', q, k) / math.sqrt(d)
    triu = jnp.triu(jnp.ones((T, T), jnp.float32), k=1)[None, None] * -10000.0
    cm = jnp.maximum(attention_mask + triu, -10000.0)
    att = att + cm
    att = jax.nn.softmax(att, axis=-1)
    out = jnp.einsum('bhqk,bhkd->bhqd', att, v)
    return out.transpose(0, 2, 1, 3).reshape(bs, T, H)


if __name__ == "__main__":
    # Small shapes: bs=2, seq_len=8, hidden=32, heads=4 (head_dim=8).
    bs, T, H, num_heads = 2, 8, 32, 4

    key = jax.random.PRNGKey(0)
    ks = jax.random.split(key, 8)
    scale = 1.0 / math.sqrt(H)
    params = {
        # stored as [in, out] so projection is x @ W + b
        "wq": jax.random.uniform(ks[0], (H, H), jnp.float32, -scale, scale),
        "wk": jax.random.uniform(ks[1], (H, H), jnp.float32, -scale, scale),
        "wv": jax.random.uniform(ks[2], (H, H), jnp.float32, -scale, scale),
        "bq": jax.random.uniform(ks[3], (1, H), jnp.float32, -scale, scale),
        "bk": jax.random.uniform(ks[4], (1, H), jnp.float32, -scale, scale),
        "bv": jax.random.uniform(ks[5], (1, H), jnp.float32, -scale, scale),
    }

    hidden_states = jax.random.normal(ks[6], (bs, T, H), jnp.float32)
    # additive attention mask [bs, 1, 1, T]: 0 for valid keys, -10000 for padded
    valid = jnp.array([[1.0] * T, [1.0] * (T - 2) + [0.0] * 2], jnp.float32)
    attention_mask = ((1.0 - valid) * -10000.0)[:, None, None, :]

    out = causal_self_attention(hidden_states, attention_mask, params, num_heads)
    out = jax.block_until_ready(out)

    ref = reference_attention(hidden_states, attention_mask, params, num_heads)
    assert out.shape == (bs, T, H)
    # bf16 MXU operands + approx reciprocal -> loosened tolerance vs f32 reference
    max_err = float(jnp.max(jnp.abs(out - ref)))
    assert jnp.allclose(out, ref, atol=3e-2, rtol=3e-2), \
        f"mismatch vs reference, max abs err = {max_err}"

    print("KERNEL_OK")
</pallas_src>

<mosaic_0001>
module attributes {stable_mosaic.version = 11 : i64} {
  func.func @_qkv_proj_kernel(%arg0: i32, %arg1: i32, %arg2: i32, %arg3: memref<16x32xbf16, #tpu.memory_space<vmem>>, %arg4: memref<32x96xbf16, #tpu.memory_space<vmem>>, %arg5: memref<1x96xf32, #tpu.memory_space<vmem>>, %arg6: memref<16x96xbf16, #tpu.memory_space<vmem>>, %arg7: memref<16x96xf32, #tpu.memory_space<vmem>>) attributes {dimension_semantics = [#tpu.dimension_semantics<parallel>, #tpu.dimension_semantics<parallel>, #tpu.dimension_semantics<arbitrary>], iteration_bounds = array<i64: 1, 1, 1>, scalar_prefetch = 0 : i64, scratch_operands = 1 : i64, tpu.core_type = #tpu.core_type<tc>, window_params = [{transform_indices = @transform_0, window_bounds = array<i64: 16, 32>}, {transform_indices = @transform_1, window_bounds = array<i64: 32, 96>}, {transform_indices = @transform_2, window_bounds = array<i64: 1, 96>}, {transform_indices = @transform_3, window_bounds = array<i64: 16, 96>}]} {
    %c0_i32 = arith.constant 0 : i32
    %0 = arith.cmpi eq, %arg2, %c0_i32 : i32
    %1 = arith.extui %0 : i1 to i32
    %c0_i32_0 = arith.constant 0 : i32
    %2 = arith.cmpi ne, %1, %c0_i32_0 : i32
    scf.if %2 {
      %cst_10 = arith.constant 0.000000e+00 : f32
      %12 = vector.broadcast %cst_10 : f32 to vector<16x96xf32>
      %c0_11 = arith.constant 0 : index
      %c0_12 = arith.constant 0 : index
      %13 = vector.load %arg7[%c0_11, %c0_12] : memref<16x96xf32, #tpu.memory_space<vmem>>, vector<16x96xf32>
      tpu.vector_store %arg7[%c0_11, %c0_12], %12 {strides = array<i32>} : memref<16x96xf32, #tpu.memory_space<vmem>>, vector<16x96xf32>,
    } else {
    }
    %c0 = arith.constant 0 : index
    %c0_1 = arith.constant 0 : index
    %3 = vector.load %arg7[%c0, %c0_1] : memref<16x96xf32, #tpu.memory_space<vmem>>, vector<16x96xf32>
    %c0_2 = arith.constant 0 : index
    %c0_3 = arith.constant 0 : index
    %4 = vector.load %arg3[%c0_2, %c0_3] : memref<16x32xbf16, #tpu.memory_space<vmem>>, vector<16x32xbf16>
    %c0_4 = arith.constant 0 : index
    %c0_5 = arith.constant 0 : index
    %5 = vector.load %arg4[%c0_4, %c0_5] : memref<32x96xbf16, #tpu.memory_space<vmem>>, vector<32x96xbf16>
    %cst = arith.constant dense<0.000000e+00> : vector<16x96xf32>
    %6 = tpu.matmul %4, %5, %cst {dimension_numbers = #tpu.dot_dimension_numbers<[1], [0], [0], [1], [0, 0, 1, 1], [], []>} : vector<16x32xbf16>, vector<32x96xbf16>, vector<16x96xf32> -> vector<16x96xf32>
    %7 = arith.addf %3, %6 : vector<16x96xf32>
    %c0_6 = arith.constant 0 : index
    %c0_7 = arith.constant 0 : index
    %8 = vector.load %arg7[%c0_6, %c0_7] : memref<16x96xf32, #tpu.memory_space<vmem>>, vector<16x96xf32>
    tpu.vector_store %arg7[%c0_6, %c0_7], %7 {strides = array<i32>} : memref<16x96xf32, #tpu.memory_space<vmem>>, vector<16x96xf32>,
    %c0_i32_8 = arith.constant 0 : i32
    %9 = arith.cmpi eq, %arg2, %c0_i32_8 : i32
    %10 = arith.extui %9 : i1 to i32
    %c0_i32_9 = arith.constant 0 : i32
    %11 = arith.cmpi ne, %10, %c0_i32_9 : i32
    scf.if %11 {
      %c0_10 = arith.constant 0 : index
      %c0_11 = arith.constant 0 : index
      %12 = vector.load %arg7[%c0_10, %c0_11] : memref<16x96xf32, #tpu.memory_space<vmem>>, vector<16x96xf32>
      %c0_12 = arith.constant 0 : index
      %c0_13 = arith.constant 0 : index
      %13 = vector.load %arg5[%c0_12, %c0_13] : memref<1x96xf32, #tpu.memory_space<vmem>>, vector<1x96xf32>
      %14 = vector.broadcast %13 : vector<1x96xf32> to vector<16x96xf32>
      %15 = arith.addf %12, %14 : vector<16x96xf32>
      %16 = arith.truncf %15 : vector<16x96xf32> to vector<16x96xbf16>
      %c0_14 = arith.constant 0 : index
      %c0_15 = arith.constant 0 : index
      %17 = vector.load %arg6[%c0_14, %c0_15] : memref<16x96xbf16, #tpu.memory_space<vmem>>, vector<16x96xbf16>
      tpu.vector_store %arg6[%c0_14, %c0_15], %16 {strides = array<i32>} : memref<16x96xbf16, #tpu.memory_space<vmem>>, vector<16x96xbf16>,
    } else {
    }
    return
  }
  func.func @transform_0(%arg0: i32, %arg1: i32, %arg2: i32) -> (i32, i32) {
    %c0_i32 = arith.constant 0 : i32
    return %arg0, %arg2 : i32, i32
  }
  func.func @transform_1(%arg0: i32, %arg1: i32, %arg2: i32) -> (i32, i32) {
    %c0_i32 = arith.constant 0 : i32
    return %arg2, %arg1 : i32, i32
  }
  func.func @transform_2(%arg0: i32, %arg1: i32, %arg2: i32) -> (i32, i32) {
    %c0_i32 = arith.constant 0 : i32
    %c0_i32_0 = arith.constant 0 : i32
    return %c0_i32, %arg1 : i32, i32
  }
  func.func @transform_3(%arg0: i32, %arg1: i32, %arg2: i32) -> (i32, i32) {
    %c0_i32 = arith.constant 0 : i32
    return %arg0, %arg1 : i32, i32
  }
}

</mosaic_0001>

<bundles_post_ra>
// kernel: tpu_custom_call.1
= control target key start
LH: loop header
LB: loop body
LE: loop exit
PB: predicated region body
PF: predicated region fallthrough
CT: control target
= control target key end

     0   :  { %8 = vsyncpa [#allocation4], 0  ;;  %s317_s0 = inlined_call_operand.hbm [shape: bf16[16,32], index: 0, kind: input, shape index: {}]   ;;  %s318_s1 = inlined_call_operand.hbm [shape: bf16[32,96], index: 1, kind: input, shape index: {}]   ;;  %s319_s2 = inlined_call_operand.vmem [shape: f32[1,96], index: 2, kind: input, shape index: {}]   ;;  %s320_s3 = inlined_call_operand.hbm [shape: bf16[16,96], index: 3, kind: output, shape index: {}]  }
   0x1   :  { %9 = vsyncpa [#allocation7], 0 }
   0x2   :  { %10 = vsyncpa [#allocation5], 0  ;;  %s265_s12 = smov [#allocation3]  }
   0x3   :  { %s16_s13 = sshll.u32 %s265_s12, 4  ;;  %s17_s13 = int_to_ptr.vmem [resolvable:$true] %s16_s13 }
   0x4   :  { %s207_s14 = scalar_lea.vmem %s17_s13, 128  ;;  %p212_p1 = scmp.lt.s32.totalorder %s17_s13, %s17_s13 }
   0x5   :  { %p208_p0 = scmp.ne.s32.totalorder %s17_s13, %s207_s14  ;;  %p213_p2 = scmp.lt.s32.totalorder %s207_s14, %s207_s14 }
   0x7   :  { %p214_p3 = por %p213_p2, %p212_p1 }
   0x9   :  { %p215_p4 = pnand %p214_p3, %p208_p0 }
   0xb   :  { %218 = shalt.err (!%p215_p4)
}
   0xc   :  { %s266_s15 = smov 64   ;;  %s267_s16 = smov 4  }
   0xd   :  { %22 = dma.hbm_to_vmem [thread:$0]  %s317_s0, 128, %s17_s13, [#allocation4], %s266_s15, %s266_s15, %s267_s16  }
   0xe   :  { %s268_s19 = smov [#allocation6]  }
   0xf   :  { %s28_s20 = sshll.u32 %s268_s19, 4  ;;  %s29_s20 = int_to_ptr.vmem [resolvable:$true] %s28_s20 }
  0x10   :  { %s227_s21 = scalar_lea.vmem %s29_s20, 256  ;;  %p232_p6 = scmp.lt.s32.totalorder %s29_s20, %s29_s20 }
  0x11   :  { %p228_p5 = scmp.ne.s32.totalorder %s29_s20, %s227_s21  ;;  %p233_p7 = scmp.lt.s32.totalorder %s227_s21, %s227_s21 }
  0x13   :  { %p234_p8 = por %p233_p7, %p232_p6 }
  0x15   :  { %p235_p9 = pnand %p234_p8, %p228_p5 }
  0x17   :  { %238 = shalt.err (!%p235_p9)
}
  0x18   :  { %34 = dma.hbm_to_vmem [thread:$0]  %s318_s1, 256, %s29_s20, [#allocation7], %s266_s15, %s266_s15, %s267_s16  }
  0x19   :  { %259 = dma.done.wait [#allocation4], 128  }
  0x1a   :  { %260 = vsyncadd [#allocation4], 4294967168 }
  0x1b   :  { %261 = dma.done.wait [#allocation7], 256  }
  0x1c   :  { %262 = vsyncadd [#allocation7], 4294967040  ;;  %vm48_vm0 = vcmask 785408   ;;  %v269_v0 = vmov 0.0   ;;  %vm270_vm1 = vmmov 0   ;;  %v196_v1 = vld [vmem:[#allocation6 + $0x8] sm:$0xff]  }
  0x1d   :  { %49 = vst.msk [vmem:[#allocation2] sm:$0xff] %vm48_vm0, %v269_v0  ;;  %50 = vst.msk [vmem:[#allocation2 + $0x8] sm:$0xff] %vm48_vm0, %v269_v0  ;;  %181 = vmatprep.subr.bf16.mxu0 %v269_v0  ;;  %185 = vmatprep.mubr.msk.bf16.mxu0 %vm270_vm1, %v269_v0  ;;  %v197_v2 = vld [vmem:[#allocation6] sm:$0xff]   ;;  %v198_v3 = vld [vmem:[#allocation3] sm:$0xff]   ;;  %vm76_vm2 = vcmask 261120   ;;  %vm148_vm3 = vcmask 781312  }
  0x1e   :  { %182 = vmatpush3.bf16.msra.mxu0 %v196_v1  ;;  %v173_v12 = vld [vmem:[%s319_s2] ss:$0 sm:$0xff]  ;;  %s271_s24 = smov [#allocation8]  }
  0x1f   :  { %183 = vmatprep.subr.bf16.mxu0 %v269_v0  ;;  %s156_s25 = sshll.u32 %s271_s24, 4  ;;  %s157_s25 = int_to_ptr.vmem [resolvable:$true] %s156_s25 }
  0x20   :  { %s239_s26 = scalar_lea.vmem %s157_s25, 128  ;;  %p244_p11 = scmp.lt.s32.totalorder %s157_s25, %s157_s25 }
  0x21   :  { %p240_p10 = scmp.ne.s32.totalorder %s157_s25, %s239_s26  ;;  %p245_p12 = scmp.lt.s32.totalorder %s239_s26, %s239_s26 }
  0x22   :  { %184 = vmatpush3.bf16.msra.mxu0 %v197_v2 }
  0x23   :  { %p246_p13 = por %p245_p12, %p244_p11 }
  0x24   :  { %v51_v4 = vld [vmem:[#allocation2] sm:$0xff]  ;;  %v52_v8 = vld [vmem:[#allocation2 + $0x8] sm:$0xff] }
  0x25   :  { %186 = vmatmul.mubr.msk.bf16.vlgmr.msra.gmra.mxu0 %vm76_vm2, %v198_v3  ;;  %p247_p0 = pnand %p246_p13, %p240_p10 }
  0xe5   :  { %v114_v5 = vpop.f32.mrf.mxu0 }
  0xe6   :  { %v121_v6 = vadd.f32 %v114_v5, %v51_v4 }
  0xe7   :  { %v187_v7 = vpop.f32.mrf.mxu0 }
  0xe8   :  { %124 = vst.msk [vmem:[#allocation2] sm:$0xff] %vm48_vm0, %v121_v6 }
  0xe9   :  { %v117_v9 = vpop.f32.mrf.mxu0 }
  0xea   :  { %v122_v10 = vadd.f32 %v117_v9, %v52_v8 }
  0xeb   :  { %v188_v11 = vpop.f32.mrf.mxu0 }
  0xec   :  { %125 = vst.msk [vmem:[#allocation2 + $0x8] sm:$0xff] %vm48_vm0, %v122_v10 }
  0xef   :  { %v129_v13 = vld [vmem:[#allocation2] sm:$0xff] }
  0xf0   :  { %v138_v14 = vadd.f32 %v173_v12, %v129_v13 }
  0xf2   :  { %v176_v15 = vpack.c.bf16 %v138_v14, %v138_v14 }
  0xf3   :  { %v130_v16 = vld [vmem:[#allocation2 + $0x8] sm:$0xff] }
  0xf4   :  { %v139_v17 = vadd.f32 %v173_v12, %v130_v16  ;;  %149 = vst.msk [vmem:[#allocation8] sm:$0xf] %vm148_vm3, %v176_v15 }
  0xf6   :  { %v177_v18 = vpack.c.bf16 %v139_v17, %v139_v17 }
  0xf8   :  { %150 = vst.msk [vmem:[#allocation8 + $0x4] sm:$0xf] %vm148_vm3, %v177_v18 }
  0xf9   :  { %250 = shalt.err (!%p247_p0)
}
  0xfa   :  { %162 = dma.vmem_to_hbm [thread:$0]  %s157_s25, 128, %s320_s3, [#allocation5], %s266_s15, %s266_s15, %s267_s16  }
  0xfb   :  { %263 = dma.done.wait [#allocation5], 128  }
  0xfc   :  { %264 = vsyncadd [#allocation5], 4294967168 }
  0xfd   :  { %166 = vsyncpa [#allocation4], 1 }
  0xfe   :  { %167 = vsyncpa [#allocation7], 1 }
  0xff   :  { %168 = vsyncpa [#allocation5], 1 }

</bundles_post_ra>
